<compile_context>
chip_gen: v7x
topology: tpu7x:2x2x1
jax: 0.10.0
libtpu: 0.0.40
codegen_flags: <defaults>
</compile_context>

<pallas_src>
import jax
import jax.numpy as jnp
from jax import lax
from jax.experimental import pallas as pl
from jax.experimental.pallas import tpu as pltpu

NEG_SLOPE = 0.01   # nn.LeakyReLU default negative_slope
BN_EPS = 1e-5      # nn.BatchNorm1d default eps


# ---------------------------------------------------------------------------
# Kernel
# ---------------------------------------------------------------------------
def mlp_kernel(x_ref, w_ref, b_ref, o_ref):
    """One row tile: (TM, IN) @ (IN, OUT) + bias, then LeakyReLU.

    x_ref : (TM, IN)   input rows               (bf16)
    w_ref : (IN, OUT)  BN-folded weight, lane-dense (bf16, VMEM-resident)
    b_ref : (1, OUT)   BN-folded bias           (f32)
    o_ref : (TM, OUT)  output rows              (f32)
    """
    # MXU matmul with f32 accumulation; result is lane-dense (TM, OUT).
    y = jnp.dot(x_ref[...], w_ref[...], preferred_element_type=jnp.float32)
    y = y + b_ref[...]                                  # (1, OUT) broadcast, f32
    # LeakyReLU (valid as max since 0 < slope < 1); dropout is identity in eval.
    # TODO(synk): training-mode dropout (pltpu.prng_*) and BN batch statistics
    # are not implemented; this kernel matches module.eval() semantics.
    o_ref[...] = jnp.maximum(y, NEG_SLOPE * y).astype(o_ref.dtype)


# ---------------------------------------------------------------------------
# Wrapper
# ---------------------------------------------------------------------------
def fold_params(w, b, gamma, beta, running_mean, running_var,
                compute_dtype=jnp.bfloat16):
    """Fold BatchNorm1d (eval) into the Linear weight / bias.

    w: PyTorch Linear weight (OUT, IN).  Returns (W' (IN, OUT), b' (1, OUT)).
    Call ONCE at parameter-load time (hoisted out of the per-forward path).
    """
    scale = gamma * lax.rsqrt(running_var + BN_EPS)                 # (OUT,)
    w_folded = (jnp.transpose(w) * scale[None, :]).astype(compute_dtype)  # (IN, OUT)
    b_folded = ((b - running_mean) * scale + beta).reshape(1, -1).astype(jnp.float32)
    return w_folded, b_folded


def _round_up(x, m):
    return ((x + m - 1) // m) * m


def _choose_row_tile(n_rows, block_rows):
    """Pick a sublane-aligned row tile; keep >= 2 grid steps when possible (v7x)."""
    tm = min(block_rows, _round_up(n_rows, 8))
    if n_rows > tm:                       # already >= 2 tiles
        return tm
    half = _round_up(pl.cdiv(n_rows, 2), 8)
    if half < n_rows:                     # splitting actually yields 2 tiles
        return half
    return tm


def mlp_forward(x, w_folded, b_folded, block_rows=512):
    """x: (N, IN) f32/bf16.  w_folded: (IN, OUT).  b_folded: (1, OUT) f32."""
    N, IN = x.shape
    OUT = w_folded.shape[1]

    x = x.astype(w_folded.dtype)          # bf16 inputs: halves x DMA, fast MXU path
    tm = _choose_row_tile(N, block_rows)
    grid = (pl.cdiv(N, tm),)

    return pl.pallas_call(
        mlp_kernel,
        out_shape=jax.ShapeDtypeStruct((N, OUT), jnp.float32),
        grid_spec=pltpu.PrefetchScalarGridSpec(
            num_scalar_prefetch=0,
            grid=grid,
            in_specs=[
                pl.BlockSpec((tm, IN), lambda i: (i, 0)),    # x row tile
                pl.BlockSpec((IN, OUT), lambda i: (0, 0)),   # folded weight (resident)
                pl.BlockSpec((1, OUT), lambda i: (0, 0)),    # folded bias   (resident)
            ],
            out_specs=pl.BlockSpec((tm, OUT), lambda i: (i, 0)),
        ),
        compiler_params=pltpu.CompilerParams(
            dimension_semantics=("parallel",)),              # v7x: 2 TCs split rows
    )(x, w_folded, b_folded)


# ---------------------------------------------------------------------------
# Pure-JAX references
# ---------------------------------------------------------------------------
def mlp_reference(x, w, b, gamma, beta, running_mean, running_var):
    """Original (eval-mode) module semantics, full f32."""
    y = x @ w.T + b
    y = (y - running_mean) / jnp.sqrt(running_var + BN_EPS) * gamma + beta
    return jnp.where(y > 0, y, NEG_SLOPE * y)


def mlp_reference_folded(x, w_folded, b_folded):
    """Quantization-matched reference (same bf16 operands as the kernel)."""
    xf = x.astype(w_folded.dtype).astype(jnp.float32)
    wf = w_folded.astype(jnp.float32)
    y = xf @ wf + b_folded
    return jnp.maximum(y, NEG_SLOPE * y)


# ---------------------------------------------------------------------------
# Demo / self-test
# ---------------------------------------------------------------------------
if __name__ == "__main__":
    # Small shapes consistent with the module: N samples, input=64, output=128.
    N, IN, OUT = 256, 64, 128

    key = jax.random.PRNGKey(0)
    kx, kw, kb, kg, kbe, km, kv = jax.random.split(key, 7)

    x = jax.random.normal(kx, (N, IN), dtype=jnp.float32)
    # PyTorch Linear weight layout: (out_features, in_features); bias: (out_features,)
    w = jax.random.normal(kw, (OUT, IN), dtype=jnp.float32) * 0.1
    b = jax.random.normal(kb, (OUT,), dtype=jnp.float32) * 0.1
    # BatchNorm1d parameters / running stats
    gamma = 1.0 + 0.1 * jax.random.normal(kg, (OUT,), dtype=jnp.float32)
    beta = 0.1 * jax.random.normal(kbe, (OUT,), dtype=jnp.float32)
    running_mean = 0.1 * jax.random.normal(km, (OUT,), dtype=jnp.float32)
    running_var = 0.5 + jax.random.uniform(kv, (OUT,), dtype=jnp.float32)   # > 0

    # Fold BN into the linear params ONCE (outside the per-call path).
    w_folded, b_folded = fold_params(w, b, gamma, beta, running_mean, running_var)

    out = mlp_forward(x, w_folded, b_folded)
    out = jax.block_until_ready(out)
    assert out.shape == (N, OUT)

    # Tight check vs a reference using the exact same bf16 operands (kernel numerics).
    ref_q = mlp_reference_folded(x, w_folded, b_folded)
    assert jnp.allclose(out, ref_q, atol=1e-4, rtol=1e-4), "kernel vs folded ref mismatch"

    # End-to-end check vs the original f32 module semantics (bf16-sized tolerance).
    ref = mlp_reference(x, w, b, gamma, beta, running_mean, running_var)
    assert jnp.allclose(out, ref, atol=5e-2, rtol=5e-2), "kernel vs f32 module mismatch"

    print("KERNEL_OK")
</pallas_src>

<mosaic_0001>
module attributes {stable_mosaic.version = 11 : i64} {
  func.func @mlp_kernel(%arg0: i32, %arg1: memref<128x64xbf16, #tpu.memory_space<vmem>>, %arg2: memref<64x128xbf16, #tpu.memory_space<vmem>>, %arg3: memref<1x128xf32, #tpu.memory_space<vmem>>, %arg4: memref<128x128xf32, #tpu.memory_space<vmem>>) attributes {dimension_semantics = [#tpu.dimension_semantics<parallel>], iteration_bounds = array<i64: 2>, scalar_prefetch = 0 : i64, scratch_operands = 0 : i64, tpu.core_type = #tpu.core_type<tc>, window_params = [{transform_indices = @transform_0, window_bounds = array<i64: 128, 64>}, {pipeline_mode = #tpu.pipeline_mode<synchronous>, transform_indices = @transform_1, window_bounds = array<i64: 64, 128>}, {pipeline_mode = #tpu.pipeline_mode<synchronous>, transform_indices = @transform_2, window_bounds = array<i64: 1, 128>}, {transform_indices = @transform_3, window_bounds = array<i64: 128, 128>}]} {
    %c0 = arith.constant 0 : index
    %c0_0 = arith.constant 0 : index
    %0 = vector.load %arg1[%c0, %c0_0] : memref<128x64xbf16, #tpu.memory_space<vmem>>, vector<128x64xbf16>
    %c0_1 = arith.constant 0 : index
    %c0_2 = arith.constant 0 : index
    %1 = vector.load %arg2[%c0_1, %c0_2] : memref<64x128xbf16, #tpu.memory_space<vmem>>, vector<64x128xbf16>
    %cst = arith.constant dense<0.000000e+00> : vector<128x128xf32>
    %2 = tpu.matmul %0, %1, %cst {dimension_numbers = #tpu.dot_dimension_numbers<[1], [0], [0], [1], [0, 0, 1, 1], [], []>} : vector<128x64xbf16>, vector<64x128xbf16>, vector<128x128xf32> -> vector<128x128xf32>
    %c0_3 = arith.constant 0 : index
    %c0_4 = arith.constant 0 : index
    %3 = vector.load %arg3[%c0_3, %c0_4] : memref<1x128xf32, #tpu.memory_space<vmem>>, vector<1x128xf32>
    %4 = vector.broadcast %3 : vector<1x128xf32> to vector<128x128xf32>
    %5 = arith.addf %2, %4 : vector<128x128xf32>
    %cst_5 = arith.constant 0.00999999977 : f32
    %6 = vector.broadcast %cst_5 : f32 to vector<128x128xf32>
    %7 = arith.mulf %6, %5 : vector<128x128xf32>
    %8 = arith.maximumf %5, %7 : vector<128x128xf32>
    %c0_6 = arith.constant 0 : index
    %c0_7 = arith.constant 0 : index
    %9 = vector.load %arg4[%c0_6, %c0_7] : memref<128x128xf32, #tpu.memory_space<vmem>>, vector<128x128xf32>
    tpu.vector_store %arg4[%c0_6, %c0_7], %8 {strides = array<i32>} : memref<128x128xf32, #tpu.memory_space<vmem>>, vector<128x128xf32>,
    return
  }
  func.func @transform_0(%arg0: i32) -> (i32, i32) {
    %c0_i32 = arith.constant 0 : i32
    %c0_i32_0 = arith.constant 0 : i32
    return %arg0, %c0_i32 : i32, i32
  }
  func.func @transform_1(%arg0: i32) -> (i32, i32) {
    %c0_i32 = arith.constant 0 : i32
    %c0_i32_0 = arith.constant 0 : i32
    %c0_i32_1 = arith.constant 0 : i32
    return %c0_i32, %c0_i32_0 : i32, i32
  }
  func.func @transform_2(%arg0: i32) -> (i32, i32) {
    %c0_i32 = arith.constant 0 : i32
    %c0_i32_0 = arith.constant 0 : i32
    %c0_i32_1 = arith.constant 0 : i32
    return %c0_i32, %c0_i32_0 : i32, i32
  }
  func.func @transform_3(%arg0: i32) -> (i32, i32) {
    %c0_i32 = arith.constant 0 : i32
    %c0_i32_0 = arith.constant 0 : i32
    return %arg0, %c0_i32 : i32, i32
  }
}

</mosaic_0001>

<bundles_post_ra>
// kernel: tpu_custom_call.1
= control target key start
LH: loop header
LB: loop body
LE: loop exit
PB: predicated region body
PF: predicated region fallthrough
CT: control target
= control target key end

     0   :  { %8 = vsyncpa [#allocation3], 0  ;;  %s880_s0 = inlined_call_operand.vmem [shape: bf16[256,64], index: 0, kind: input, shape index: {}]   ;;  %s881_s1 = inlined_call_operand.vmem [shape: bf16[64,128], index: 1, kind: input, shape index: {}]   ;;  %s882_s2 = inlined_call_operand.vmem [shape: f32[1,128], index: 2, kind: input, shape index: {}]   ;;  %s883_s3 = inlined_call_operand.hbm [shape: f32[256,128], index: 3, kind: output, shape index: {}]  }
   0x1   :  { %10 = vsyncpa [#allocation3 + $0x1], 0  ;;  %s732_s12 = smov 0   ;;  %s734_s13 = smov 0  }
   0x2   :  { %s736_s14 = smov 0   ;;  %s738_s15 = smov 0  }
   0x3 LB: > { %s753_s16 = sadd.s32 4294967295, %s707_s15   ;;  %s514_s17 = sadd.s32 4294967294, %s707_s15   ;;  %s707_s15 = sphi %s738_s15, %s889_s15   ;;  %s703_s14 = sphi %s736_s14, %s888_s14   ;;  %s699_s13 = sphi %s734_s13, %s887_s13   ;;  %s695_s12 = sphi %s732_s12, %s886_s12  }
   0x4   : > { %s757_s18 = sadd.s32 1, %s707_s15   ;;  %s91_s19 = sadd.s32 1, %s703_s14 }
   0x5   : > { %s88_s20 = ssub.s32 %s707_s15, %s757_s18  ;;  %p101_p0 = scmp.ne.s32.totalorder %s703_s14, %s699_s13 }
   0x6   : > { %p89_p1 = scmp.eq.s32.totalorder %s88_s20, 0  ;;  %p102_p2 = scmp.eq.s32.totalorder %s753_s16, 1 }
   0x7   : > { %p107_p3 = scmp.ne.s32.totalorder %s699_s13, %s695_s12  ;;  %p108_p4 = scmp.eq.s32.totalorder %s514_s17, 1 }
   0x8   : > { %s768_s21 = scalar_select %p89_p1, %s703_s14, %s91_s19  }
   0x9   : > { %p770_p5 = por %p102_p2, %p101_p0  ;;  %p774_p6 = por %p108_p4, %p107_p3 }
   0xa   : > { %p517_p7 = scmp.ge.s32.totalorder %s707_s15, 1  ;;  %p141_p8 = scmp.lt.s32.totalorder %s707_s15, 3 }
   0xc   : > { %p142_p9 = pnand %p517_p7, %p141_p8 }
   0xd   : > { %v633_v0 = vld [vmem:[%s881_s1] sm:$0xff] (!%p142_p9)   ;;  %s519_s26 = sshll.u32 (!%p142_p9), %s753_s16, 4  ;;  %v634_v1 = vld [vmem:[%s881_s1 + $0x8] sm:$0xff] (!%p142_p9)   ;;  %v635_v2 = vld [vmem:[%s881_s1 + $0x10] sm:$0xff] (!%p142_p9)   ;;  %vm268_vm0 = vcmask (!%p142_p9), 523264   ;;  %s162_s10 = sand.u32 (!%p142_p9), 1, %s699_s13  }
   0xe   : > { %145 = sbr.rel (%p142_p9) target bundleno = 274 (0x112), region = 32  ;;  %p166_p10 = scmp.lt.s32.totalorder (!%p142_p9), %s519_s26, 31  ;;  %560 = vmatprep.subr.bf16.mxu0 (!%p142_p9), %v633_v0  ;;  %584 = vmatprep.subr.bf16.mxu1 (!%p142_p9), %v633_v0  ;;  %v636_v3 = vld [vmem:[%s881_s1 + $0x18] sm:$0xff] (!%p142_p9)   ;;  %v521_v12 = vld [vmem:[%s882_s2] ss:$0 sm:$0xff] (!%p142_p9) }
   0xf   : > { %561 = vmatpush3.bf16.msra.mxu0 (!%p142_p9), %v633_v0  ;;  %588 = vmatpush3.bf16.msra.mxu1 (!%p142_p9), %v633_v0  ;;  %s518_s19 = sshll.u32 (!%p142_p9), %s162_s10, 7  ;;  %s547_s24 = sshll.u32 (!%p142_p9), %s753_s16, 11 }
  0x10   : > { %562 = vmatprep.subr.bf16.mxu0 (!%p142_p9), %v634_v1  ;;  %585 = vmatprep.subr.bf16.mxu1 (!%p142_p9), %v634_v1  ;;  %s810_s20 = scalar_lea.vmem (!%p142_p9), [#allocation2], %s518_s19  ;;  %s827_s27 = scalar_lea.hbm (!%p142_p9), %s883_s3, %s547_s24 }
  0x11   : > { %s452_s25 = sshll.u32 (!%p142_p9), %s810_s20, 4  ;;  %s839_s28 = scalar_lea.sflag (!%p142_p9), [#allocation3], %s162_s10  ;;  %s829_s25 = int_to_ptr.vmem [resolvable:$true] %s452_s25 }
  0x12   : > { %s645_s29 = scalar_lea.vmem (!%p142_p9), %s829_s25, 2048  ;;  %s709_s30 = smov (!%p142_p9), [#allocation2]  }
  0x13   : > { %563 = vmatpush3.bf16.msra.mxu0 (!%p142_p9), %v634_v1  ;;  %589 = vmatpush3.bf16.msra.mxu1 (!%p142_p9), %v634_v1  ;;  %p646_p11 = scmp.ne.s32.totalorder (!%p142_p9), %s829_s25, %s645_s29 }
  0x14   : > { %564 = vmatprep.subr.bf16.mxu0 (!%p142_p9), %v635_v2  ;;  %586 = vmatprep.subr.bf16.mxu1 (!%p142_p9), %v635_v2 }
  0x15   : > { %s891_s26 = smov (!%p166_p10, %s519_s26), 31  ;;  %p647_p12 = pnand %p646_p11, %p770_p5 }
  0x16   : > { %s520_s4 = sshll.u32 %s891_s26, 2 }
  0x17   : > { %s169_s9 = scalar_lea.vmem %s880_s0, %s520_s4  ;;  %565 = vmatpush3.bf16.msra.mxu0 %v635_v2  ;;  %590 = vmatpush3.bf16.msra.mxu1 %v635_v2  ;;  %p648_p13 = pneg %p647_p12 }
  0x18   : > { %v637_v4 = vld [vmem:[%s169_s9] sm:$0xff]   ;;  %566 = vmatprep.subr.bf16.mxu0 %v636_v3  ;;  %587 = vmatprep.subr.bf16.mxu1 %v636_v3  ;;  %v639_v6 = vld [vmem:[%s169_s9 + $0x8] sm:$0xff]   ;;  %v641_v8 = vld [vmem:[%s169_s9 + $0x10] sm:$0xff]   ;;  %s649_s4 = sshll.u32 %s709_s30, 4  ;;  %s650_s4 = int_to_ptr.vmem [resolvable:$false] %s649_s4 }
  0x19   : > { %v638_v5 = vld [vmem:[%s169_s9 + $0x20] sm:$0xff]   ;;  %568 = vmatprep.mubr.msk.bf16.mxu0 %vm268_vm0, %v637_v4  ;;  %v640_v7 = vld [vmem:[%s169_s9 + $0x28] sm:$0xff]   ;;  %v642_v9 = vld [vmem:[%s169_s9 + $0x30] sm:$0xff]   ;;  %s651_s5 = scalar_lea.vmem %s650_s4, 4096  ;;  %p652_p0 = scmp.lt.s32.totalorder %s829_s25, %s650_s4 }
  0x1a   : > { %576 = vmatprep.mubr.msk.bf16.mxu1 %vm268_vm0, %v638_v5  ;;  %v643_v10 = vld [vmem:[%s169_s9 + $0x18] sm:$0xff]   ;;  %p653_p1 = scmp.lt.s32.totalorder %s651_s5, %s645_s29 }
  0x1b   : > { %567 = vmatpush3.bf16.msra.mxu0 %v636_v3  ;;  %591 = vmatpush3.bf16.msra.mxu1 %v636_v3  ;;  %v644_v11 = vld [vmem:[%s169_s9 + $0x38] sm:$0xff]  }
  0x1c   : > { %p654_p2 = por %p653_p1, %p652_p0 }
  0x1e   : > { %569 = vmatmul.mubr.msk.bf16.vlgmr.msra.gmra.mrb[0].mxu0 %vm268_vm0, %v639_v6  ;;  %577 = vmatmul.mubr.msk.bf16.vlgmr.msra.gmra.mrb[0].mxu1 %vm268_vm0, %v640_v7  ;;  %p655_p3 = pnand %p654_p2, %p648_p13 }
  0x1f   : > { %572 = vmatprep.mubr.msk.bf16.mxu0 %vm268_vm0, %v641_v8  ;;  %580 = vmatprep.mubr.msk.bf16.mxu1 %vm268_vm0, %v642_v9 }
  0x26   : > { %573 = vmatmul.mubr.msk.bf16.gmra.mrb[4].mxu0 %vm268_vm0, %v643_v10  ;;  %581 = vmatmul.mubr.msk.bf16.gmra.mrb[4].mxu1 %vm268_vm0, %v644_v11 }
  0xf1   : > { %v570_v13 = vpop.f32.mrb[0].mxu0  ;;  %v578_v14 = vpop.f32.mrb[0].mxu1 }
  0xf2   : > { %v336_v15 = vadd.f32 %v570_v13, %v521_v12  ;;  %v368_v16 = vadd.f32 %v578_v14, %v521_v12  ;;  %v327_v17 = vpop.f32.mrb[1].mxu0  ;;  %v359_v18 = vpop.f32.mrb[1].mxu1 }
  0xf3   : > { %v328_v19 = vadd.f32 %v521_v12, %v327_v17  ;;  %v360_v20 = vadd.f32 %v521_v12, %v359_v18  ;;  %v571_v21 = vpop.f32.mrb[2].mxu0  ;;  %v579_v22 = vpop.f32.mrb[2].mxu1 }
  0xf4   : > { %v392_v23 = vmul.f32 0.01, %v336_v15  ;;  %v400_v24 = vmul.f32 0.01, %v368_v16  ;;  %v339_v25 = vadd.f32 %v571_v21, %v521_v12  ;;  %v371_v26 = vadd.f32 %v579_v22, %v521_v12  ;;  %v330_v27 = vpop.f32.mrb[3].mxu0  ;;  %v362_v28 = vpop.f32.mrb[3].mxu1 }
  0xf5   : > { %v390_v29 = vmul.f32 0.01, %v328_v19  ;;  %v398_v30 = vmul.f32 0.01, %v360_v20  ;;  %v331_v31 = vadd.f32 %v521_v12, %v330_v27  ;;  %v363_v32 = vadd.f32 %v521_v12, %v362_v28 }
  0xf6   : > { %v408_v33 = vmax.f32 %v336_v15, %v392_v23  ;;  %v416_v34 = vmax.f32 %v368_v16, %v400_v24  ;;  %v393_v35 = vmul.f32 0.01, %v339_v25  ;;  %v401_v36 = vmul.f32 0.01, %v371_v26 }
  0xf7   : > { %v406_v37 = vmax.f32 %v328_v19, %v390_v29  ;;  %v414_v38 = vmax.f32 %v360_v20, %v398_v30  ;;  %v391_v39 = vmul.f32 0.01, %v331_v31  ;;  %v399_v40 = vmul.f32 0.01, %v363_v32 }
  0xf8   : > { %424 = vst [vmem:[%s810_s20 + $0x10] sm:$0xff] %v408_v33  ;;  %432 = vst [vmem:[%s810_s20 + $0x50] sm:$0xff] %v416_v34  ;;  %v409_v41 = vmax.f32 %v339_v25, %v393_v35  ;;  %v417_v42 = vmax.f32 %v371_v26, %v401_v36 }
  0xf9   : > { %422 = vst [vmem:[%s810_s20] sm:$0xff] %v406_v37  ;;  %430 = vst [vmem:[%s810_s20 + $0x40] sm:$0xff] %v414_v38  ;;  %v407_v43 = vmax.f32 %v331_v31, %v391_v39  ;;  %v415_v44 = vmax.f32 %v363_v32, %v399_v40  ;;  %v574_v45 = vpop.f32.mrb[4].mxu0  ;;  %v582_v46 = vpop.f32.mrb[4].mxu1 }
  0xfa   : > { %425 = vst [vmem:[%s810_s20 + $0x18] sm:$0xff] %v409_v41  ;;  %433 = vst [vmem:[%s810_s20 + $0x58] sm:$0xff] %v417_v42  ;;  %v352_v47 = vadd.f32 %v574_v45, %v521_v12  ;;  %v384_v48 = vadd.f32 %v582_v46, %v521_v12  ;;  %v343_v49 = vpop.f32.mrb[5].mxu0  ;;  %v375_v50 = vpop.f32.mrb[5].mxu1 }
  0xfb   : > { %423 = vst [vmem:[%s810_s20 + $0x8] sm:$0xff] %v407_v43  ;;  %431 = vst [vmem:[%s810_s20 + $0x48] sm:$0xff] %v415_v44  ;;  %v344_v51 = vadd.f32 %v521_v12, %v343_v49  ;;  %v376_v52 = vadd.f32 %v521_v12, %v375_v50  ;;  %v575_v53 = vpop.f32.mrb[6].mxu0  ;;  %v583_v54 = vpop.f32.mrb[6].mxu1 }
  0xfc   : > { %v396_v55 = vmul.f32 0.01, %v352_v47  ;;  %v404_v56 = vmul.f32 0.01, %v384_v48  ;;  %v355_v57 = vadd.f32 %v575_v53, %v521_v12  ;;  %v387_v58 = vadd.f32 %v583_v54, %v521_v12  ;;  %v346_v59 = vpop.f32.mrb[7].mxu0  ;;  %v378_v60 = vpop.f32.mrb[7].mxu1 }
  0xfd   : > { %v394_v61 = vmul.f32 0.01, %v344_v51  ;;  %v402_v62 = vmul.f32 0.01, %v376_v52  ;;  %v347_v63 = vadd.f32 %v521_v12, %v346_v59  ;;  %v379_v0 = vadd.f32 %v521_v12, %v378_v60 }
  0xfe   : > { %v412_v1 = vmax.f32 %v352_v47, %v396_v55  ;;  %v420_v2 = vmax.f32 %v384_v48, %v404_v56  ;;  %v397_v3 = vmul.f32 0.01, %v355_v57  ;;  %v405_v4 = vmul.f32 0.01, %v387_v58 }
  0xff   : > { %v410_v5 = vmax.f32 %v344_v51, %v394_v61  ;;  %v418_v6 = vmax.f32 %v376_v52, %v402_v62  ;;  %v395_v7 = vmul.f32 0.01, %v347_v63  ;;  %v403_v8 = vmul.f32 0.01, %v379_v0 }
 0x100   : > { %428 = vst [vmem:[%s810_s20 + $0x30] sm:$0xff] %v412_v1  ;;  %436 = vst [vmem:[%s810_s20 + $0x70] sm:$0xff] %v420_v2  ;;  %v413_v9 = vmax.f32 %v355_v57, %v397_v3  ;;  %v421_v10 = vmax.f32 %v387_v58, %v405_v4 }
 0x101   : > { %426 = vst [vmem:[%s810_s20 + $0x20] sm:$0xff] %v410_v5  ;;  %434 = vst [vmem:[%s810_s20 + $0x60] sm:$0xff] %v418_v6  ;;  %v411_v11 = vmax.f32 %v347_v63, %v395_v7  ;;  %v419_v12 = vmax.f32 %v379_v0, %v403_v8 }
 0x102   : > { %429 = vst [vmem:[%s810_s20 + $0x38] sm:$0xff] %v413_v9  ;;  %437 = vst [vmem:[%s810_s20 + $0x78] sm:$0xff] %v421_v10 }
 0x103   : > { %427 = vst [vmem:[%s810_s20 + $0x28] sm:$0xff] %v411_v11  ;;  %435 = vst [vmem:[%s810_s20 + $0x68] sm:$0xff] %v419_v12 }
 0x104   : > { %658 = shalt.err (!%p655_p3)
}
 0x105   : > { %s659_s6 = scalar_lea.hbm %s827_s27, 2048  ;;  %s663_s9 = scalar_lea.hbm %s883_s3, 4096 }
 0x106   : > { %p660_p4 = scmp.ne.s32.totalorder %s827_s27, %s659_s6  ;;  %p664_p9 = scmp.lt.u32.totalorder %s827_s27, %s883_s3 }
 0x107   : > { %p665_p10 = scmp.lt.u32.totalorder %s663_s9, %s659_s6  ;;  %p667_p12 = scmp.lt.u32.totalorder %s659_s6, %s827_s27 }
 0x108   : > { %p661_p7 = pnand %p660_p4, %p770_p5 }
 0x109   : > { %p666_p11 = por %p665_p10, %p664_p9 }
 0x10a   : > { %p662_p8 = pneg %p661_p7 }
 0x10b   : > { %p668_p13 = por %p667_p12, %p666_p11 }
 0x10d   : > { %p669_p0 = pnand %p668_p13, %p662_p8 }
 0x10f   : > { %672 = shalt.err (!%p669_p0)
}
 0x110   : > { %s710_s17 = smov 128   ;;  %s711_s19 = smov 8  }
 0x111   : > { %592 = dma.vmem_to_hbm [thread:$0]  (%p770_p5), %s829_s25, 2048, %s827_s27, %s839_s28, %s710_s17, %s710_s17, %s711_s19  }
 0x112 PF: > { %p598_p1 = scmp.ge.s32.totalorder %s707_s15, 2  ;;  %s467_s20 = sand.u32 1, %s695_s12  }
 0x113   : > { %s468_s24 = scalar_lea.sflag [#allocation3], %s467_s20 }
 0x114   : > { %p595_p2 = pnand %p598_p1, %p774_p6 }
 0x116   : > { %690 = dma.done.wait (!%p595_p2), %s468_s24, 2048  }
 0x117   : > { %692 = vsyncadd (!%p595_p2), %s468_s24, 4294965248  ;;  %p13_p3 = scmp.ge.s32.totalorder %s757_s18, 4   ;;  %s886_s12 = smov %s699_s13 }
 0x118   : > { %s887_s13 = smov %s703_s14  ;;  %s888_s14 = smov %s768_s21 }
 0x119   : > { %s889_s15 = smov %s757_s18  ;;  %15 = sbr.rel (!%p13_p3) target bundleno = 3 (0x3), region = 67 }
 0x120   :  { %473 = vsyncpa [#allocation3], 1 }
 0x121   :  { %475 = vsyncpa [#allocation3 + $0x1], 1 }

</bundles_post_ra>
